<compile_context>
chip_gen: v7x
topology: tpu7x:2x2x1
jax: 0.10.0
libtpu: 0.0.40
codegen_flags: <defaults>
</compile_context>

<pallas_src>
import functools

import jax
import jax.numpy as jnp
from jax.experimental import pallas as pl
from jax.experimental.pallas import tpu as pltpu


def _round_up(v, m):
    return (v + m - 1) // m * m


def mlp_kernel(x_ref, w1_ref, b1_ref, w2_ref, b2_ref, o_ref):
    """One batch tile of fc2(relu(fc1(x)))."""
    # x_ref:  [TB, F]   unpadded input tile (F = 2)
    # w1_ref: [F, Hp]   fc1 weight, hidden dim zero-padded to 128 lanes
    # b1_ref: [1, Hp]
    # w2_ref: [Hp, Cp]  fc2 weight, class dim zero-padded to 128 lanes
    # b2_ref: [1, Cp]
    # o_ref:  [TB, C]   compact logits (C = n_classes)
    x = x_ref[...]
    w1 = w1_ref[...]

    # fc1 as a rank-F VPU update: K=F(=2) would badly underuse the MXU, and
    # keeping it off the MXU lets x stay unpadded in HBM.
    h = x[:, 0:1] * w1[0:1, :]
    for f in range(1, x.shape[1]):
        h = h + x[:, f : f + 1] * w1[f : f + 1, :]
    h = jnp.maximum(h + b1_ref[...], 0.0)  # [TB, Hp]; padded hidden lanes stay 0

    # fc2 on the MXU with aligned (Hp, Cp) tiles; slice to the C useful lanes
    # so only 4*C bytes/row leave the kernel (masked store, no lane padding).
    out = jnp.dot(h, w2_ref[...], preferred_element_type=jnp.float32) + b2_ref[...]
    o_ref[...] = out[:, : o_ref.shape[1]].astype(o_ref.dtype)


def prepare_params(w1, b1, w2, b2):
    """One-time lane-alignment padding of weights/biases (off the hot path).

    w1: [F, H], b1: [1, H], w2: [H, C], b2: [1, C]  (stored as [in, out]).
    Zero padding keeps the forward pass exact.
    """
    f32 = jnp.float32
    F, H = w1.shape
    C = w2.shape[1]
    Hp = _round_up(H, 128)
    Cp = _round_up(C, 128)
    w1p = jnp.zeros((F, Hp), f32).at[:, :H].set(w1.astype(f32))
    b1p = jnp.zeros((1, Hp), f32).at[:, :H].set(b1.astype(f32))
    w2p = jnp.zeros((Hp, Cp), f32).at[:H, :C].set(w2.astype(f32))
    b2p = jnp.zeros((1, Cp), f32).at[:, :C].set(b2.astype(f32))
    return w1p, b1p, w2p, b2p


@functools.partial(jax.jit, static_argnames=("n_classes", "block_b"))
def net_forward(x, w1p, b1p, w2p, b2p, *, n_classes, block_b=2048):
    """x: [B, F] float32 -> logits [B, n_classes] == relu(x @ w1 + b1) @ w2 + b2."""
    B, F = x.shape
    Hp = w1p.shape[1]
    Cp = w2p.shape[1]
    C = n_classes

    # Batch tile: multiple of 8 sublanes, capped at block_b, and capped near
    # ceil(B/2) so the grid has >=2 steps whenever possible (lets the
    # "parallel" batch axis shard across both v7x TensorCores).
    TB = max(8, min(block_b, _round_up(pl.cdiv(B, 2), 8)))
    grid = (pl.cdiv(B, TB),)

    return pl.pallas_call(
        mlp_kernel,
        out_shape=jax.ShapeDtypeStruct((B, C), jnp.float32),
        grid=grid,
        in_specs=[
            pl.BlockSpec((TB, F), lambda i: (i, 0)),   # stream unpadded batch tiles
            pl.BlockSpec((F, Hp), lambda i: (0, 0)),   # weights/biases pinned in VMEM
            pl.BlockSpec((1, Hp), lambda i: (0, 0)),
            pl.BlockSpec((Hp, Cp), lambda i: (0, 0)),
            pl.BlockSpec((1, Cp), lambda i: (0, 0)),
        ],
        out_specs=pl.BlockSpec((TB, C), lambda i: (i, 0)),  # compact [B, C] logits
        compiler_params=pltpu.CompilerParams(
            dimension_semantics=("parallel",),  # batch axis shards across TCs (v7x)
            vmem_limit_bytes=32 << 20,          # headroom vs. v5e's 16 MiB default
        ),
    )(x, w1p, b1p, w2p, b2p)


def init_params(key, n_features, n_hidden, n_classes):
    """Deterministic init mimicking nn.Linear's uniform(-1/sqrt(fan_in), 1/sqrt(fan_in))."""
    k1, k2, k3, k4 = jax.random.split(key, 4)
    bound1 = 1.0 / jnp.sqrt(jnp.float32(n_features))
    bound2 = 1.0 / jnp.sqrt(jnp.float32(n_hidden))
    # Stored as [in, out] (transpose of PyTorch's [out, in]) so kernel does x @ W.
    w1 = jax.random.uniform(k1, (n_features, n_hidden), jnp.float32, -bound1, bound1)
    b1 = jax.random.uniform(k2, (1, n_hidden), jnp.float32, -bound1, bound1)
    w2 = jax.random.uniform(k3, (n_hidden, n_classes), jnp.float32, -bound2, bound2)
    b2 = jax.random.uniform(k4, (1, n_classes), jnp.float32, -bound2, bound2)
    return w1, b1, w2, b2


if __name__ == "__main__":
    n_features = 2   # matches `n_features = 2` in the reference script
    n_hidden = 32
    n_classes = 3    # len(centers)
    batch = 8

    key = jax.random.PRNGKey(0)
    kx, kp = jax.random.split(key)
    x = jax.random.normal(kx, (batch, n_features), jnp.float32)
    w1, b1, w2, b2 = init_params(kp, n_features, n_hidden, n_classes)

    # One-time padded/prepared parameters (steady-state path is a single pallas_call).
    w1p, b1p, w2p, b2p = prepare_params(w1, b1, w2, b2)

    logits = net_forward(x, w1p, b1p, w2p, b2p, n_classes=n_classes)
    logits = jax.block_until_ready(logits)

    # Pure-JAX reference check
    ref = jnp.maximum(x @ w1 + b1, 0.0) @ w2 + b2
    assert logits.shape == (batch, n_classes)
    assert jnp.allclose(logits, ref, atol=1e-5, rtol=1e-5)

    # Larger batch: exercises >=2 grid steps and a ragged last tile.
    xb = jax.random.normal(kx, (1000, n_features), jnp.float32)
    logits_b = jax.block_until_ready(
        net_forward(xb, w1p, b1p, w2p, b2p, n_classes=n_classes))
    ref_b = jnp.maximum(xb @ w1 + b1, 0.0) @ w2 + b2
    assert logits_b.shape == (1000, n_classes)
    assert jnp.allclose(logits_b, ref_b, atol=1e-5, rtol=1e-5)

    print("KERNEL_OK")
</pallas_src>

<mosaic_0001>
module attributes {stable_mosaic.version = 11 : i64} {
  func.func @mlp_kernel(%arg0: i32, %arg1: memref<8x2xf32, #tpu.memory_space<vmem>>, %arg2: memref<2x128xf32, #tpu.memory_space<vmem>>, %arg3: memref<1x128xf32, #tpu.memory_space<vmem>>, %arg4: memref<128x128xf32, #tpu.memory_space<vmem>>, %arg5: memref<1x128xf32, #tpu.memory_space<vmem>>, %arg6: memref<8x3xf32, #tpu.memory_space<vmem>>) attributes {dimension_semantics = [#tpu.dimension_semantics<parallel>], iteration_bounds = array<i64: 1>, scalar_prefetch = 0 : i64, scratch_operands = 0 : i64, tpu.core_type = #tpu.core_type<tc>, window_params = [{transform_indices = @transform_0, window_bounds = array<i64: 8, 2>}, {pipeline_mode = #tpu.pipeline_mode<synchronous>, transform_indices = @transform_1, window_bounds = array<i64: 2, 128>}, {pipeline_mode = #tpu.pipeline_mode<synchronous>, transform_indices = @transform_2, window_bounds = array<i64: 1, 128>}, {pipeline_mode = #tpu.pipeline_mode<synchronous>, transform_indices = @transform_3, window_bounds = array<i64: 128, 128>}, {pipeline_mode = #tpu.pipeline_mode<synchronous>, transform_indices = @transform_4, window_bounds = array<i64: 1, 128>}, {transform_indices = @transform_5, window_bounds = array<i64: 8, 3>}]} {
    %c0 = arith.constant 0 : index
    %c0_0 = arith.constant 0 : index
    %0 = vector.load %arg1[%c0, %c0_0] : memref<8x2xf32, #tpu.memory_space<vmem>>, vector<8x2xf32>
    %c0_1 = arith.constant 0 : index
    %c0_2 = arith.constant 0 : index
    %1 = vector.load %arg2[%c0_1, %c0_2] : memref<2x128xf32, #tpu.memory_space<vmem>>, vector<2x128xf32>
    %2 = vector.extract_strided_slice %0 {offsets = [0, 0], sizes = [8, 1], strides = [1, 1]} : vector<8x2xf32> to vector<8x1xf32>
    %3 = vector.extract_strided_slice %1 {offsets = [0, 0], sizes = [1, 128], strides = [1, 1]} : vector<2x128xf32> to vector<1x128xf32>
    %4 = vector.broadcast %2 : vector<8x1xf32> to vector<8x128xf32>
    %5 = vector.broadcast %3 : vector<1x128xf32> to vector<8x128xf32>
    %6 = arith.mulf %4, %5 : vector<8x128xf32>
    %7 = vector.extract_strided_slice %0 {offsets = [0, 1], sizes = [8, 1], strides = [1, 1]} : vector<8x2xf32> to vector<8x1xf32>
    %8 = vector.extract_strided_slice %1 {offsets = [1, 0], sizes = [1, 128], strides = [1, 1]} : vector<2x128xf32> to vector<1x128xf32>
    %9 = vector.broadcast %7 : vector<8x1xf32> to vector<8x128xf32>
    %10 = vector.broadcast %8 : vector<1x128xf32> to vector<8x128xf32>
    %11 = arith.mulf %9, %10 : vector<8x128xf32>
    %12 = arith.addf %6, %11 : vector<8x128xf32>
    %c0_3 = arith.constant 0 : index
    %c0_4 = arith.constant 0 : index
    %13 = vector.load %arg3[%c0_3, %c0_4] : memref<1x128xf32, #tpu.memory_space<vmem>>, vector<1x128xf32>
    %14 = vector.broadcast %13 : vector<1x128xf32> to vector<8x128xf32>
    %15 = arith.addf %12, %14 : vector<8x128xf32>
    %cst = arith.constant 0.000000e+00 : f32
    %16 = vector.broadcast %cst : f32 to vector<8x128xf32>
    %17 = arith.maximumf %15, %16 : vector<8x128xf32>
    %c0_5 = arith.constant 0 : index
    %c0_6 = arith.constant 0 : index
    %18 = vector.load %arg4[%c0_5, %c0_6] : memref<128x128xf32, #tpu.memory_space<vmem>>, vector<128x128xf32>
    %cst_7 = arith.constant dense<0.000000e+00> : vector<8x128xf32>
    %19 = tpu.matmul %17, %18, %cst_7 {dimension_numbers = #tpu.dot_dimension_numbers<[1], [0], [0], [1], [0, 0, 1, 1], [], []>} : vector<8x128xf32>, vector<128x128xf32>, vector<8x128xf32> -> vector<8x128xf32>
    %c0_8 = arith.constant 0 : index
    %c0_9 = arith.constant 0 : index
    %20 = vector.load %arg5[%c0_8, %c0_9] : memref<1x128xf32, #tpu.memory_space<vmem>>, vector<1x128xf32>
    %21 = vector.broadcast %20 : vector<1x128xf32> to vector<8x128xf32>
    %22 = arith.addf %19, %21 : vector<8x128xf32>
    %23 = vector.extract_strided_slice %22 {offsets = [0, 0], sizes = [8, 3], strides = [1, 1]} : vector<8x128xf32> to vector<8x3xf32>
    %c0_10 = arith.constant 0 : index
    %c0_11 = arith.constant 0 : index
    %24 = vector.load %arg6[%c0_10, %c0_11] : memref<8x3xf32, #tpu.memory_space<vmem>>, vector<8x3xf32>
    tpu.vector_store %arg6[%c0_10, %c0_11], %23 {strides = array<i32>} : memref<8x3xf32, #tpu.memory_space<vmem>>, vector<8x3xf32>,
    return
  }
  func.func @transform_0(%arg0: i32) -> (i32, i32) {
    %c0_i32 = arith.constant 0 : i32
    %c0_i32_0 = arith.constant 0 : i32
    return %arg0, %c0_i32 : i32, i32
  }
  func.func @transform_1(%arg0: i32) -> (i32, i32) {
    %c0_i32 = arith.constant 0 : i32
    %c0_i32_0 = arith.constant 0 : i32
    %c0_i32_1 = arith.constant 0 : i32
    return %c0_i32, %c0_i32_0 : i32, i32
  }
  func.func @transform_2(%arg0: i32) -> (i32, i32) {
    %c0_i32 = arith.constant 0 : i32
    %c0_i32_0 = arith.constant 0 : i32
    %c0_i32_1 = arith.constant 0 : i32
    return %c0_i32, %c0_i32_0 : i32, i32
  }
  func.func @transform_3(%arg0: i32) -> (i32, i32) {
    %c0_i32 = arith.constant 0 : i32
    %c0_i32_0 = arith.constant 0 : i32
    %c0_i32_1 = arith.constant 0 : i32
    return %c0_i32, %c0_i32_0 : i32, i32
  }
  func.func @transform_4(%arg0: i32) -> (i32, i32) {
    %c0_i32 = arith.constant 0 : i32
    %c0_i32_0 = arith.constant 0 : i32
    %c0_i32_1 = arith.constant 0 : i32
    return %c0_i32, %c0_i32_0 : i32, i32
  }
  func.func @transform_5(%arg0: i32) -> (i32, i32) {
    %c0_i32 = arith.constant 0 : i32
    %c0_i32_0 = arith.constant 0 : i32
    return %arg0, %c0_i32 : i32, i32
  }
}

</mosaic_0001>

<bundles_post_ra>
// kernel: net_forward.1
= control target key start
LH: loop header
LB: loop body
LE: loop exit
PB: predicated region body
PF: predicated region fallthrough
CT: control target
= control target key end

     0   :  { %10 = vsyncpa [#allocation3], 0  ;;  %s277_s18 = smov [#allocation2]   ;;  %s342_s0 = inlined_call_operand.vmem [shape: f32[8,2], index: 0, kind: input, shape index: {}]   ;;  %s343_s1 = inlined_call_operand.vmem [shape: f32[2,128], index: 1, kind: input, shape index: {}]   ;;  %s344_s2 = inlined_call_operand.vmem [shape: f32[1,128], index: 2, kind: input, shape index: {}]   ;;  %s345_s3 = inlined_call_operand.hbm [shape: f32[128,128], index: 3, kind: input, shape index: {}]   ;;  %s346_s4 = inlined_call_operand.vmem [shape: f32[1,128], index: 4, kind: input, shape index: {}]   ;;  %s347_s5 = inlined_call_operand.vmem [shape: f32[8,3], index: 5, kind: output, shape index: {}]  }
   0x1   :  { %s22_s19 = sshll.u32 %s277_s18, 4  ;;  %s253_s22 = scalar_lea.hbm %s345_s3, 2048  ;;  %s23_s19 = int_to_ptr.vmem [resolvable:$true] %s22_s19 }
   0x2   :  { %p254_p0 = scmp.ne.s32.totalorder %s345_s3, %s253_s22  ;;  %p257_p1 = scmp.lt.u32.totalorder %s253_s22, %s345_s3 }
   0x4   :  { %p259_p2 = pnand %p257_p1, %p254_p0 }
   0x6   :  { %262 = shalt.err (!%p259_p2)
}
   0x7   :  { %s263_s27 = scalar_lea.vmem %s23_s19, 2048  ;;  %p268_p4 = scmp.lt.s32.totalorder %s23_s19, %s23_s19 }
   0x8   :  { %p264_p3 = scmp.ne.s32.totalorder %s23_s19, %s263_s27  ;;  %p269_p5 = scmp.lt.s32.totalorder %s263_s27, %s263_s27 }
   0xa   :  { %p270_p6 = por %p269_p5, %p268_p4 }
   0xc   :  { %p271_p7 = pnand %p270_p6, %p264_p3 }
   0xe   :  { %274 = shalt.err (!%p271_p7)
}
   0xf   :  { %s278_s28 = smov 128   ;;  %s279_s29 = smov 8  }
  0x10   :  { %28 = dma.hbm_to_vmem [thread:$0]  %s345_s3, 2048, %s23_s19, [#allocation3], %s278_s28, %s278_s28, %s279_s29  }
  0x11   :  { %275 = dma.done.wait [#allocation3], 2048  }
  0x12   :  { %276 = vsyncadd [#allocation3], 4294965248  ;;  %v280_v0 = vmov 0   ;;  %v281_v1 = vmov 0.0|0.0   ;;  %v34_v2 = vld [vmem:[%s342_s0] sm:$0xff]  ;;  %v66_v4 = vld [vmem:[#allocation2 + $0x8] sm:$0xff]  ;;  %v41_v29 = vlaneseq }
  0x13   :  { %251 = vset.pattern.permute.xlu0 %v280_v0  ;;  %219 = vmatprep.subr.bf16.mxu0 %v281_v1  ;;  %v65_v3 = vld [vmem:[#allocation2] sm:$0xff]  ;;  %v67_v6 = vld [vmem:[#allocation2 + $0x10] sm:$0xff]  ;;  %v68_v7 = vld [vmem:[#allocation2 + $0x18] sm:$0xff]  ;;  %v282_v11 = vmov 1   ;;  %vm283_vm0 = vmmov 0   ;;  %v284_v15 = vmov 0.0  }
  0x14   :  { %38 = vperm.xlu0 %251, %v34_v2   ;;  %v220_v5 = vpack.c.bf16 %v66_v4, %v65_v3  ;;  %v223_v8 = vpack.c.bf16 %v68_v7, %v67_v6  ;;  %v69_v9 = vld [vmem:[#allocation2 + $0x20] sm:$0xff]  ;;  %v70_v10 = vld [vmem:[#allocation2 + $0x28] sm:$0xff]  ;;  %v71_v13 = vld [vmem:[#allocation2 + $0x30] sm:$0xff]  ;;  %216 = vmatprep.mubr.msk.f32.mxu0 %vm283_vm0, %v284_v15  ;;  %v42_v30 = vshrl.u32 %v41_v29, 7  ;;  %vm158_vm1 = vcmask 23552  }
  0x15   :  { %v226_v12 = vpack.c.bf16 %v70_v10, %v69_v9  ;;  %v72_v14 = vld [vmem:[#allocation2 + $0x38] sm:$0xff]  ;;  %v73_v17 = vld [vmem:[#allocation2 + $0x40] sm:$0xff]  ;;  %v74_v18 = vld [vmem:[#allocation2 + $0x48] sm:$0xff] }
  0x16   :  { %221 = vmatpush3.bf16.msra.mxu0 %v220_v5  ;;  %v229_v16 = vpack.c.bf16 %v72_v14, %v71_v13  ;;  %v232_v19 = vpack.c.bf16 %v74_v18, %v73_v17  ;;  %v75_v20 = vld [vmem:[#allocation2 + $0x50] sm:$0xff]  ;;  %v76_v21 = vld [vmem:[#allocation2 + $0x58] sm:$0xff]  ;;  %v77_v23 = vld [vmem:[#allocation2 + $0x60] sm:$0xff]  ;;  %v43_v31 = vsub.s32 0, %v42_v30  ;;  %v52_v32 = vsub.s32 1, %v42_v30 }
  0x17   :  { %222 = vmatprep.subr.bf16.mxu0 %v281_v1  ;;  %v235_v22 = vpack.c.bf16 %v76_v21, %v75_v20  ;;  %v78_v24 = vld [vmem:[#allocation2 + $0x68] sm:$0xff]  ;;  %v79_v26 = vld [vmem:[#allocation2 + $0x70] sm:$0xff]  ;;  %v80_v27 = vld [vmem:[#allocation2 + $0x78] sm:$0xff] }
  0x18   :  { %252 = vset.pattern.permute.xlu0 %v282_v11  ;;  %v238_v25 = vpack.c.bf16 %v78_v24, %v77_v23  ;;  %v241_v28 = vpack.c.bf16 %v80_v27, %v79_v26  ;;  %v35_v33 = vld [vmem:[%s343_s1] sm:$0x3] }
  0x19   :  { %47 = vperm.xlu0 %252, %v34_v2   ;;  %v44_v35 = vrot.slane %v35_v33, %v43_v31  ;;  %v53_v36 = vrot.slane %v35_v33, %v52_v32  ;;  %v165_v40 = vld [vmem:[%s344_s2] ss:$0 sm:$0xff] }
  0x1a   :  { %224 = vmatpush3.bf16.msra.mxu0 %v223_v8  ;;  %v166_v44 = vld [vmem:[%s346_s4] ss:$0 sm:$0xff] }
  0x1b   :  { %225 = vmatprep.subr.bf16.mxu0 %v281_v1 }
  0x1e   :  { %227 = vmatpush3.bf16.msra.mxu0 %v226_v12 }
  0x1f   :  { %228 = vmatprep.subr.bf16.mxu0 %v281_v1 }
  0x22   :  { %230 = vmatpush3.bf16.msra.mxu0 %v229_v16 }
  0x23   :  { %231 = vmatprep.subr.bf16.mxu0 %v281_v1 }
  0x26   :  { %233 = vmatpush3.bf16.msra.mxu0 %v232_v19 }
  0x27   :  { %234 = vmatprep.subr.bf16.mxu0 %v281_v1 }
  0x2a   :  { %236 = vmatpush3.bf16.msra.mxu0 %v235_v22 }
  0x2b   :  { %237 = vmatprep.subr.bf16.mxu0 %v281_v1 }
  0x2e   :  { %239 = vmatpush3.bf16.msra.mxu0 %v238_v25 }
  0x2f   :  { %240 = vmatprep.subr.bf16.mxu0 %v281_v1 }
  0x32   :  { %242 = vmatpush3.bf16.msra.mxu0 %v241_v28 }
  0x93   :  { %v39_v34 = vpop.permute.xlu0 %38 }
  0x94   :  { %v45_v38 = vmul.f32 %v44_v35, %v39_v34 }
  0x98   :  { %v48_v37 = vpop.permute.xlu0 %47 }
  0x99   :  { %v54_v39 = vmul.f32 %v53_v36, %v48_v37 }
  0x9b   :  { %v55_v41 = vadd.f32 %v54_v39, %v45_v38 }
  0x9d   :  { %v63_v42 = vadd.f32 %v165_v40, %v55_v41 }
  0x9f   :  { %v64_v43 = vmax.f32 %v63_v42, 0.0 }
  0xa1   :  { %217 = vmatmul.mubr.f32.vlgmr.msra.gmra.mrb[0].mxu0 %v64_v43 }
 0x174   :  { %v154_v45 = vpop.f32.mrb[0].mxu0 }
 0x175   :  { %v155_v46 = vadd.f32 %v166_v44, %v154_v45  ;;  %v218_v47 = vpop.f32.mrb[1].mxu0 }
 0x177   :  { %159 = vst.msk [vmem:[%s347_s5] sm:$0xff] %vm158_vm1, %v155_v46 }
 0x178   :  { %164 = vsyncpa [#allocation3], 1 }

</bundles_post_ra>
